<compile_context>
chip_gen: v7x
topology: tpu7x:2x2x1
jax: 0.10.0
libtpu: 0.0.40
codegen_flags: <defaults>
</compile_context>

<pallas_src>
import jax
import jax.numpy as jnp
from jax.experimental import pallas as pl
from jax.experimental.pallas import tpu as pltpu


# ------------------------- Pallas kernel ------------------------------------
def basic_block_kernel(x_ref, w_ref, b_ref, gamma_ref, beta_ref, out_ref):
    # x_ref    : (B, C_in, L)     f32, NCL (same layout as the PyTorch input)
    # w_ref    : (C_out, K*C_in)  bf16, w2[o, k*C_in + c] = weight[o, c, k]
    # b_ref    : (C_out, 1)       f32 conv bias
    # gamma_ref: (C_out, 1)       f32 BN weight
    # beta_ref : (C_out, 1)       f32 BN bias
    # out_ref  : (B, C_out, L)    f32, NCL
    x = x_ref[...]
    B, C_in, L = x.shape
    C_out, KC = w_ref.shape
    K = KC // C_in
    n_adj = (K - 1) // 2

    # ---- circular im2col, built fully in-kernel (shift axis = lane axis) ---
    xb = x.astype(jnp.bfloat16)                      # bf16 MXU operands
    x2 = jnp.concatenate([xb, xb], axis=-1)          # (B, C_in, 2L)
    taps = []
    for k in range(K):                               # static unroll, K = 9
        s = (k - n_adj) % L                          # circular lane shift
        taps.append(jax.lax.slice_in_dim(x2, s, s + L, axis=2))
    xim = jnp.concatenate(taps, axis=1)              # (B, K*C_in, L)

    # ---- conv: ONE batched MXU contraction over K*C_in ---------------------
    w = jnp.broadcast_to(w_ref[...], (B, C_out, KC))
    y = jax.lax.dot_general(
        w, xim,
        dimension_numbers=(((2,), (1,)), ((0,), (0,))),
        preferred_element_type=jnp.float32)          # (B, C_out, L) f32

    # ---- bias + ReLU (f32) --------------------------------------------------
    y = jnp.maximum(y + b_ref[...], 0.0)

    # ---- BatchNorm1d (training mode), fused single-pass statistics ---------
    # per-channel stats over (B, L); biased variance; eps = 1e-5
    n = jnp.float32(B * L)
    s1 = jnp.sum(y, axis=(0, 2), keepdims=True)      # (1, C_out, 1)
    s2 = jnp.sum(y * y, axis=(0, 2), keepdims=True)  # (1, C_out, 1)
    mean = s1 / n
    var = s2 / n - mean * mean
    inv = jax.lax.rsqrt(var + 1e-5)
    scale = gamma_ref[...] * inv                     # (1, C_out, 1)
    shift = beta_ref[...] - mean * scale             # (1, C_out, 1)
    out_ref[...] = (y * scale + shift).astype(out_ref.dtype)


# ------------------------- Wrapper ------------------------------------------
def basic_block_forward(x_ncl, weight, bias, gamma, beta, n_adj):
    """x_ncl: (B, C_in, L) like PyTorch.  Returns (B, C_out, L)."""
    B, C_in, L = x_ncl.shape
    C_out, _, K = weight.shape
    assert K == 2 * n_adj + 1
    assert n_adj <= L  # circular pad semantics (same constraint as the module)

    # One-time parameter prep (tiny): fold the tap axis into the contraction
    # dim so the kernel does a single matmul; cast matmul weight to bf16.
    w2 = jnp.transpose(weight, (0, 2, 1)).reshape(C_out, K * C_in)
    w2 = w2.astype(jnp.bfloat16)
    b_col = bias.reshape(C_out, 1).astype(jnp.float32)
    g_col = gamma.reshape(C_out, 1).astype(jnp.float32)
    beta_col = beta.reshape(C_out, 1).astype(jnp.float32)

    vmem = pl.BlockSpec(memory_space=pltpu.MemorySpace.VMEM)
    # TODO(synk): for realistic (B, L) add a grid over B/L with BlockSpec
    # pipelining (tiles budgeted for v7x's 64 MiB VMEM, one 'parallel' axis
    # for megacore) plus a cross-tile sum/sum-of-squares accumulator for the
    # global BN statistics; at these toy shapes everything fits in one block.
    return pl.pallas_call(
        basic_block_kernel,
        out_shape=jax.ShapeDtypeStruct((B, C_out, L), jnp.float32),
        in_specs=[vmem] * 5,
        out_specs=vmem,
    )(x_ncl.astype(jnp.float32), w2, b_col, g_col, beta_col)


# ------------------------- Pure-JAX reference -------------------------------
def basic_block_reference(x_ncl, weight, bias, gamma, beta, n_adj,
                          matmul_dtype=jnp.float32):
    """Reference of the PyTorch module (training-mode BN).

    `matmul_dtype` optionally rounds the conv operands to bf16 (mirroring the
    kernel's MXU inputs) while keeping all arithmetic in f32."""
    B, C_in, L = x_ncl.shape
    C_out, _, K = weight.shape
    xq = x_ncl.astype(matmul_dtype).astype(jnp.float32)
    wq = weight.astype(matmul_dtype).astype(jnp.float32)
    x_pad = jnp.concatenate([xq[..., -n_adj:], xq, xq[..., :n_adj]], axis=2)
    out = jnp.zeros((B, C_out, L), jnp.float32)
    for k in range(K):
        out = out + jnp.einsum("oc,bcl->bol", wq[:, :, k], x_pad[:, :, k:k + L])
    out = out + bias[None, :, None]
    out = jnp.maximum(out, 0.0)
    mean = jnp.mean(out, axis=(0, 2), keepdims=True)
    var = jnp.mean((out - mean) ** 2, axis=(0, 2), keepdims=True)
    out = (out - mean) * jax.lax.rsqrt(var + 1e-5)
    return out * gamma[None, :, None] + beta[None, :, None]


# ------------------------- Main ---------------------------------------------
if __name__ == "__main__":
    # BasicBlock(state_dim=4, out_state_dim=8, conv_type='grid', n_adj=4)
    B, C_in, C_out, L, n_adj = 2, 4, 8, 16, 4
    K = 2 * n_adj + 1

    key = jax.random.PRNGKey(0)
    kx, kw, kb = jax.random.split(key, 3)

    x = jax.random.normal(kx, (B, C_in, L), dtype=jnp.float32)
    weight = 0.1 * jax.random.normal(kw, (C_out, C_in, K), dtype=jnp.float32)
    bias = 0.05 * jax.random.normal(kb, (C_out,), dtype=jnp.float32)
    gamma = jnp.ones((C_out,), dtype=jnp.float32)   # BatchNorm1d default weight
    beta = jnp.zeros((C_out,), dtype=jnp.float32)   # BatchNorm1d default bias

    out = jax.block_until_ready(
        basic_block_forward(x, weight, bias, gamma, beta, n_adj))
    assert out.shape == (B, C_out, L)

    # Tight check against a reference whose conv operands are rounded to bf16
    # exactly like the kernel's MXU inputs (f32 accumulation on both sides).
    ref_q = jax.block_until_ready(basic_block_reference(
        x, weight, bias, gamma, beta, n_adj, matmul_dtype=jnp.bfloat16))
    assert jnp.allclose(out, ref_q, rtol=1e-4, atol=1e-4)

    # Loose check against the full-f32 PyTorch-semantics reference; the only
    # difference is bf16 quantization of the matmul operands.
    ref = jax.block_until_ready(basic_block_reference(
        x, weight, bias, gamma, beta, n_adj))
    assert jnp.allclose(out, ref, rtol=5e-2, atol=5e-2)

    print("KERNEL_OK")
</pallas_src>

<mosaic_0001>
module attributes {stable_mosaic.version = 11 : i64} {
  func.func @basic_block_kernel(%arg0: memref<2x4x16xf32, #tpu.memory_space<vmem>>, %arg1: memref<8x36xbf16, #tpu.memory_space<vmem>>, %arg2: memref<8x1xf32, #tpu.memory_space<vmem>>, %arg3: memref<8x1xf32, #tpu.memory_space<vmem>>, %arg4: memref<8x1xf32, #tpu.memory_space<vmem>>, %arg5: memref<2x8x16xf32, #tpu.memory_space<vmem>>) attributes {dimension_semantics = [], scalar_prefetch = 0 : i64, scratch_operands = 0 : i64, tpu.core_type = #tpu.core_type<tc>} {
    %c0 = arith.constant 0 : index
    %c0_0 = arith.constant 0 : index
    %c0_1 = arith.constant 0 : index
    %0 = vector.load %arg0[%c0, %c0_0, %c0_1] : memref<2x4x16xf32, #tpu.memory_space<vmem>>, vector<2x4x16xf32>
    %1 = arith.truncf %0 : vector<2x4x16xf32> to vector<2x4x16xbf16>
    %2 = tpu.concatenate %1, %1 in 2 : vector<2x4x16xbf16>, vector<2x4x16xbf16> -> vector<2x4x32xbf16>
    %3 = vector.extract_strided_slice %2 {offsets = [0, 0, 12], sizes = [2, 4, 16], strides = [1, 1, 1]} : vector<2x4x32xbf16> to vector<2x4x16xbf16>
    %4 = vector.extract_strided_slice %2 {offsets = [0, 0, 13], sizes = [2, 4, 16], strides = [1, 1, 1]} : vector<2x4x32xbf16> to vector<2x4x16xbf16>
    %5 = vector.extract_strided_slice %2 {offsets = [0, 0, 14], sizes = [2, 4, 16], strides = [1, 1, 1]} : vector<2x4x32xbf16> to vector<2x4x16xbf16>
    %6 = vector.extract_strided_slice %2 {offsets = [0, 0, 15], sizes = [2, 4, 16], strides = [1, 1, 1]} : vector<2x4x32xbf16> to vector<2x4x16xbf16>
    %7 = vector.extract_strided_slice %2 {offsets = [0, 0, 0], sizes = [2, 4, 16], strides = [1, 1, 1]} : vector<2x4x32xbf16> to vector<2x4x16xbf16>
    %8 = vector.extract_strided_slice %2 {offsets = [0, 0, 1], sizes = [2, 4, 16], strides = [1, 1, 1]} : vector<2x4x32xbf16> to vector<2x4x16xbf16>
    %9 = vector.extract_strided_slice %2 {offsets = [0, 0, 2], sizes = [2, 4, 16], strides = [1, 1, 1]} : vector<2x4x32xbf16> to vector<2x4x16xbf16>
    %10 = vector.extract_strided_slice %2 {offsets = [0, 0, 3], sizes = [2, 4, 16], strides = [1, 1, 1]} : vector<2x4x32xbf16> to vector<2x4x16xbf16>
    %11 = vector.extract_strided_slice %2 {offsets = [0, 0, 4], sizes = [2, 4, 16], strides = [1, 1, 1]} : vector<2x4x32xbf16> to vector<2x4x16xbf16>
    %12 = tpu.concatenate %3, %4, %5, %6, %7, %8, %9, %10, %11 in 1 : vector<2x4x16xbf16>, vector<2x4x16xbf16>, vector<2x4x16xbf16>, vector<2x4x16xbf16>, vector<2x4x16xbf16>, vector<2x4x16xbf16>, vector<2x4x16xbf16>, vector<2x4x16xbf16>, vector<2x4x16xbf16> -> vector<2x36x16xbf16>
    %c0_2 = arith.constant 0 : index
    %c0_3 = arith.constant 0 : index
    %13 = vector.load %arg1[%c0_2, %c0_3] : memref<8x36xbf16, #tpu.memory_space<vmem>>, vector<8x36xbf16>
    %14 = vector.shape_cast %13 : vector<8x36xbf16> to vector<1x8x36xbf16>
    %15 = vector.broadcast %14 : vector<1x8x36xbf16> to vector<2x8x36xbf16>
    %cst = arith.constant dense<0.000000e+00> : vector<2x8x16xf32>
    %16 = tpu.matmul %15, %12, %cst {dimension_numbers = #tpu.dot_dimension_numbers<[2], [1], [1], [2], [0, 0, 0, 1, 1, 2], [0], [0]>} : vector<2x8x36xbf16>, vector<2x36x16xbf16>, vector<2x8x16xf32> -> vector<2x8x16xf32>
    %c0_4 = arith.constant 0 : index
    %c0_5 = arith.constant 0 : index
    %17 = vector.load %arg2[%c0_4, %c0_5] : memref<8x1xf32, #tpu.memory_space<vmem>>, vector<8x1xf32>
    %18 = vector.shape_cast %17 : vector<8x1xf32> to vector<1x8x1xf32>
    %19 = vector.broadcast %18 : vector<1x8x1xf32> to vector<2x8x16xf32>
    %20 = arith.addf %16, %19 : vector<2x8x16xf32>
    %cst_6 = arith.constant 0.000000e+00 : f32
    %21 = vector.broadcast %cst_6 : f32 to vector<2x8x16xf32>
    %22 = arith.maximumf %20, %21 : vector<2x8x16xf32>
    %cst_7 = arith.constant dense<0.000000e+00> : vector<8xf32>
    %23 = vector.multi_reduction <add>, %22, %cst_7 [0, 2] : vector<2x8x16xf32> to vector<8xf32>
    %24 = vector.shape_cast %23 : vector<8xf32> to vector<1x8x1xf32>
    %25 = arith.mulf %22, %22 : vector<2x8x16xf32>
    %cst_8 = arith.constant dense<0.000000e+00> : vector<8xf32>
    %26 = vector.multi_reduction <add>, %25, %cst_8 [0, 2] : vector<2x8x16xf32> to vector<8xf32>
    %27 = vector.shape_cast %26 : vector<8xf32> to vector<1x8x1xf32>
    %cst_9 = arith.constant 3.200000e+01 : f32
    %28 = vector.broadcast %cst_9 : f32 to vector<1x8x1xf32>
    %29 = arith.divf %24, %28 : vector<1x8x1xf32>
    %cst_10 = arith.constant 3.200000e+01 : f32
    %30 = vector.broadcast %cst_10 : f32 to vector<1x8x1xf32>
    %31 = arith.divf %27, %30 : vector<1x8x1xf32>
    %32 = arith.mulf %29, %29 : vector<1x8x1xf32>
    %33 = arith.subf %31, %32 : vector<1x8x1xf32>
    %cst_11 = arith.constant 9.99999974E-6 : f32
    %34 = vector.broadcast %cst_11 : f32 to vector<1x8x1xf32>
    %35 = arith.addf %33, %34 : vector<1x8x1xf32>
    %36 = math.rsqrt %35 : vector<1x8x1xf32>
    %c0_12 = arith.constant 0 : index
    %c0_13 = arith.constant 0 : index
    %37 = vector.load %arg3[%c0_12, %c0_13] : memref<8x1xf32, #tpu.memory_space<vmem>>, vector<8x1xf32>
    %38 = vector.shape_cast %37 : vector<8x1xf32> to vector<1x8x1xf32>
    %39 = arith.mulf %38, %36 : vector<1x8x1xf32>
    %c0_14 = arith.constant 0 : index
    %c0_15 = arith.constant 0 : index
    %40 = vector.load %arg4[%c0_14, %c0_15] : memref<8x1xf32, #tpu.memory_space<vmem>>, vector<8x1xf32>
    %41 = arith.mulf %29, %39 : vector<1x8x1xf32>
    %42 = vector.shape_cast %40 : vector<8x1xf32> to vector<1x8x1xf32>
    %43 = arith.subf %42, %41 : vector<1x8x1xf32>
    %44 = vector.broadcast %39 : vector<1x8x1xf32> to vector<2x8x16xf32>
    %45 = arith.mulf %22, %44 : vector<2x8x16xf32>
    %46 = vector.broadcast %43 : vector<1x8x1xf32> to vector<2x8x16xf32>
    %47 = arith.addf %45, %46 : vector<2x8x16xf32>
    %c0_16 = arith.constant 0 : index
    %c0_17 = arith.constant 0 : index
    %c0_18 = arith.constant 0 : index
    %48 = vector.load %arg5[%c0_16, %c0_17, %c0_18] : memref<2x8x16xf32, #tpu.memory_space<vmem>>, vector<2x8x16xf32>
    tpu.vector_store %arg5[%c0_16, %c0_17, %c0_18], %47 {strides = array<i32>} : memref<2x8x16xf32, #tpu.memory_space<vmem>>, vector<2x8x16xf32>,
    return
  }
}

</mosaic_0001>

<bundles_post_ra>
// kernel: tpu_custom_call.1
= control target key start
LH: loop header
LB: loop body
LE: loop exit
PB: predicated region body
PF: predicated region fallthrough
CT: control target
= control target key end

     0   :  { %s470_s0 = inlined_call_operand.vmem [shape: f32[2,4,16], index: 0, kind: input, shape index: {}]   ;;  %s471_s1 = inlined_call_operand.vmem [shape: bf16[8,36], index: 1, kind: input, shape index: {}]   ;;  %s472_s2 = inlined_call_operand.vmem [shape: f32[8,1], index: 2, kind: input, shape index: {}]   ;;  %s473_s3 = inlined_call_operand.vmem [shape: f32[8,1], index: 3, kind: input, shape index: {}]   ;;  %s474_s4 = inlined_call_operand.vmem [shape: f32[8,1], index: 4, kind: input, shape index: {}]   ;;  %s475_s5 = inlined_call_operand.hbm [shape: f32[2,8,16], index: 5, kind: output, shape index: {}]  }
   0x1   :  { %v22_v0 = vld [vmem:[%s470_s0] sm:$0xf]  ;;  %v23_v1 = vld [vmem:[%s470_s0 + $0x4] sm:$0xf] }
   0x2   :  { %v24_v2 = vpack.c.bf16 %v22_v0, %v22_v0 }
   0x3   :  { %10 = vsyncpa [#allocation3], 0  ;;  %s356_s22 = smov 16   ;;  %v25_v3 = vpack.c.bf16 %v23_v1, %v23_v1  ;;  %vm32_vm0 = vcmask 130048   ;;  %s357_s23 = smov 12   ;;  %v365_v14 = vmov 0.0  }
   0x4   :  { %28 = vrot.lane.b32.xlu0 %v24_v2, %s356_s22  ;;  %s358_s24 = smov 126   ;;  %s359_s0 = smov 125   ;;  %293 = vmatprep.subr.bf16.mxu0 %v365_v14  ;;  %vm79_vm1 = vcmask 1041408   ;;  %vm84_vm2 = vcmask 1043456   ;;  %vm89_vm3 = vcmask 1045504   ;;  %vm367_vm4 = vmmov 0  }
   0x5   :  { %s360_s25 = smov 127   ;;  %s361_s26 = smov 11   ;;  %303 = vmatprep.subr.bf16.mxu1 %v365_v14  ;;  %299 = vmatprep.mubr.msk.bf16.mxu0 %vm367_vm4, %v365_v14  ;;  %v109_v38 = vld [vmem:[%s472_s2] sm:$0xff]  ;;  %v368_v39 = vmov 0   ;;  %vm125_vm5 = vcmask 293888  }
   0x6   :  { %s362_s27 = smov 10   ;;  %s363_s28 = smov 9   ;;  %309 = vmatprep.mubr.msk.bf16.mxu1 %vm367_vm4, %v365_v14  ;;  %328 = vset.pattern.permute.xlu0 %v368_v39  ;;  %v108_v50 = vld [vmem:[%s471_s1] sm:$0xf] }
   0x7   :  { %s364_s29 = smov 8   ;;  %s366_s30 = smov 116   ;;  %329 = vset.pattern.permute.xlu1 %v368_v39 }
   0x8   :  { %30 = vrot.lane.b32.xlu0 %v25_v3, %s356_s22  ;;  %s369_s12 = smov [#allocation2]  }
   0x9   :  { %s272_s13 = sshll.u32 %s369_s12, 4  ;;  %s273_s13 = int_to_ptr.vmem [resolvable:$true] %s272_s13 }
   0xa   :  { %p337_p1 = scmp.lt.s32.totalorder %s273_s13, %s273_s13 }
  0x76   :  { %v29_v4 = vpop.permute.xlu0 %28 }
  0x77   :  { %v35_v5 = vsel %vm32_vm0, %v24_v2, %v29_v4 }
  0x78   :  { %59 = vrot.lane.b32.xlu0 %v35_v5, %s357_s23  ;;  %v47_v7 = vrot.slane %v35_v5, 4  ;;  %v53_v9 = vrot.slane %v35_v5, 2  ;;  %v41_v10 = vrot.slane %v35_v5, 6 }
  0x7a   :  { %v31_v6 = vpop.permute.xlu0 %30 }
  0x7b   :  { %v38_v8 = vsel %vm32_vm0, %v25_v3, %v31_v6 }
  0x7c   :  { %49 = vrot.lane.b32.xlu0 %v47_v7, %s358_s24  ;;  %61 = vrot.lane.b32.xlu1 %v38_v8, %s357_s23  ;;  %v42_v11 = vrot.slane %v38_v8, 6  ;;  %v48_v12 = vrot.slane %v38_v8, 4  ;;  %v54_v13 = vrot.slane %v38_v8, 2 }
  0x80   :  { %55 = vrot.lane.b32.xlu0 %v53_v9, %s359_s0  ;;  %43 = vrot.lane.b32.xlu1 %v41_v10, %s360_s25 }
  0x84   :  { %63 = vrot.lane.b32.xlu0 %v41_v10, %s361_s26  ;;  %45 = vrot.lane.b32.xlu1 %v42_v11, %s360_s25 }
  0x88   :  { %67 = vrot.lane.b32.xlu0 %v47_v7, %s362_s27  ;;  %51 = vrot.lane.b32.xlu1 %v48_v12, %s358_s24 }
  0x8c   :  { %71 = vrot.lane.b32.xlu0 %v53_v9, %s363_s28  ;;  %57 = vrot.lane.b32.xlu1 %v54_v13, %s359_s0 }
  0x90   :  { %75 = vrot.lane.b32.xlu0 %v35_v5, %s364_s29  ;;  %65 = vrot.lane.b32.xlu1 %v42_v11, %s361_s26 }
  0x94   :  { %69 = vrot.lane.b32.xlu1 %v48_v12, %s362_s27 }
  0x98   :  { %73 = vrot.lane.b32.xlu1 %v54_v13, %s363_s28 }
  0x9c   :  { %77 = vrot.lane.b32.xlu1 %v38_v8, %s364_s29 }
  0xea   :  { %v60_v15 = vpop.permute.xlu0 %59 }
  0xee   :  { %v62_v16 = vpop.permute.xlu1 %61  ;;  %v50_v17 = vpop.permute.xlu0 %49 }
  0xf2   :  { %v44_v18 = vpop.permute.xlu1 %43  ;;  %v56_v19 = vpop.permute.xlu0 %55 }
  0xf3   :  { %v81_v20 = vsel %vm79_vm1, %v35_v5, %v44_v18  ;;  %v246_v18 = vld [vmem:[%s473_s3] sm:$0xff]  ;;  %s332_s3 = scalar_lea.vmem %s273_s13, 256 }
  0xf4   :  { %v86_v21 = vsel %vm84_vm2, %v81_v20, %v50_v17  ;;  %p333_p0 = scmp.ne.s32.totalorder %s273_s13, %s332_s3  ;;  %p338_p2 = scmp.lt.s32.totalorder %s332_s3, %s332_s3 }
  0xf5   :  { %v91_v22 = vsel %vm89_vm3, %v86_v21, %v56_v19  ;;  %v248_v21 = vld [vmem:[%s474_s4] sm:$0xff] }
  0xf6   :  { %v46_v23 = vpop.permute.xlu1 %45  ;;  %117 = vrot.lane.b32.xlu0 %v91_v22, %s366_s30  ;;  %v64_v24 = vpop.permute.xlu0 %63  ;;  %p339_p3 = por %p338_p2, %p337_p1 }
  0xf7   :  { %v83_v27 = vsel %vm79_vm1, %v38_v8, %v46_v23  ;;  %v96_v28 = vsel %vm79_vm1, %v60_v15, %v64_v24 }
  0xf8   :  { %p340_p4 = pnand %p339_p3, %p333_p0 }
  0xfa   :  { %v52_v25 = vpop.permute.xlu1 %51  ;;  %v68_v26 = vpop.permute.xlu0 %67 }
  0xfb   :  { %v88_v29 = vsel %vm84_vm2, %v83_v27, %v52_v25  ;;  %v101_v30 = vsel %vm84_vm2, %v96_v28, %v68_v26 }
  0xfe   :  { %v58_v31 = vpop.permute.xlu1 %57  ;;  %v72_v32 = vpop.permute.xlu0 %71 }
  0xff   :  { %v93_v33 = vsel %vm89_vm3, %v88_v29, %v58_v31  ;;  %v105_v34 = vsel %vm89_vm3, %v101_v30, %v72_v32 }
 0x100   :  { %174 = vrot.lane.b32.xlu1 %v93_v33, %s366_s30  ;;  %119 = vrot.lane.b32.xlu0 %v105_v34, %s366_s30 }
 0x102   :  { %v66_v35 = vpop.permute.xlu1 %65  ;;  %v76_v36 = vpop.permute.xlu0 %75 }
 0x103   :  { %v99_v40 = vsel %vm79_vm1, %v62_v16, %v66_v35 }
 0x104   :  { %121 = vrot.lane.b32.xlu0 %v76_v36, %s366_s30 }
 0x106   :  { %v70_v37 = vpop.permute.xlu1 %69 }
 0x107   :  { %v103_v41 = vsel %vm84_vm2, %v99_v40, %v70_v37 }
 0x108   :  { %112 = vperm.xlu0 %328, %v109_v38  }
 0x10a   :  { %v74_v42 = vpop.permute.xlu1 %73 }
 0x10b   :  { %v107_v43 = vsel %vm89_vm3, %v103_v41, %v74_v42 }
 0x10c   :  { %176 = vrot.lane.b32.xlu1 %v107_v43, %s366_s30 }
 0x10e   :  { %v78_v44 = vpop.permute.xlu1 %77 }
 0x110   :  { %178 = vrot.lane.b32.xlu1 %v78_v44, %s366_s30 }
 0x168   :  { %v118_v45 = vpop.permute.xlu0 %117 }
 0x169   :  { %294 = vmatpush3.bf16.msra.mxu0 %v118_v45 }
 0x16a   :  { %295 = vmatprep.subr.bf16.mxu0 %v365_v14 }
 0x172   :  { %v175_v46 = vpop.permute.xlu1 %174  ;;  %v120_v47 = vpop.permute.xlu0 %119 }
 0x173   :  { %296 = vmatpush3.bf16.msra.mxu0 %v120_v47  ;;  %304 = vmatpush3.bf16.msra.mxu1 %v175_v46 }
 0x174   :  { %297 = vmatprep.subr.bf16.mxu0 %v365_v14  ;;  %305 = vmatprep.subr.bf16.mxu1 %v365_v14 }
 0x176   :  { %v122_v48 = vpop.permute.xlu0 %121 }
 0x177   :  { %v130_v49 = vsel %vm79_vm1, %v122_v48, 0 }
 0x178   :  { %298 = vmatpush3.bf16.msra.mxu0 %v130_v49 }
 0x17b   :  { %300 = vmatmul.mubr.msk.bf16.vlgmr.msra.gmra.mrb[0].mxu0 %vm125_vm5, %v108_v50 }
 0x17e   :  { %v177_v51 = vpop.permute.xlu1 %176 }
 0x17f   :  { %306 = vmatpush3.bf16.msra.mxu1 %v177_v51 }
 0x180   :  { %307 = vmatprep.subr.bf16.mxu1 %v365_v14 }
 0x182   :  { %v179_v52 = vpop.permute.xlu1 %178 }
 0x183   :  { %v183_v53 = vsel %vm79_vm1, %v179_v52, 0 }
 0x184   :  { %308 = vmatpush3.bf16.msra.mxu1 %v183_v53 }
 0x187   :  { %310 = vmatmul.mubr.msk.bf16.vlgmr.msra.gmra.mrb[0].mxu1 %vm125_vm5, %v108_v50  ;;  %v113_v57 = vpop.permute.xlu0 %112 }
 0x24e   :  { %v166_v54 = vpop.f32.mrb[0].mxu0 }
 0x24f   :  { %v301_v55 = vpop.f32.mrb[1].mxu0  ;;  %v167_v59 = vadd.f32 %v166_v54, %v113_v57 }
 0x250   :  { %v169_v56 = vpop.f32.mrb[2].mxu0 }
 0x251   :  { %v302_v58 = vpop.f32.mrb[3].mxu0  ;;  %v225_v60 = vmax.f32 %v167_v59, 0.0 }
 0x253   :  { %v232_v0 = vmul.f32 %v225_v60, %v225_v60  ;;  %v227_v4 = vsel %vm32_vm0, %v225_v60, 0.0 }
 0x255   :  { %v234_v7 = vsel %vm32_vm0, %v232_v0, 0.0 }
 0x25a   :  { %v219_v61 = vpop.f32.mrb[0].mxu1 }
 0x25b   :  { %v220_v62 = vadd.f32 %v219_v61, %v113_v57  ;;  %v311_v63 = vpop.f32.mrb[1].mxu1 }
 0x25c   :  { %v222_v1 = vpop.f32.mrb[2].mxu1 }
 0x25d   :  { %v226_v2 = vmax.f32 %v220_v62, 0.0  ;;  %v312_v3 = vpop.f32.mrb[3].mxu1 }
 0x25f   :  { %v228_v5 = vsel %vm32_vm0, %v226_v2, 0.0  ;;  %v233_v6 = vmul.f32 %v226_v2, %v226_v2 }
 0x260   :  { %v229_v8 = vadd.f32 %v228_v5, %v227_v4 }
 0x261   :  { %v235_v9 = vsel %vm32_vm0, %v233_v6, 0.0 }
 0x262   :  { %230 = vadd.xlane.f32.xlu1 %v229_v8  ;;  %v236_v10 = vadd.f32 %v235_v9, %v234_v7 }
 0x264   :  { %237 = vadd.xlane.f32.xlu0 %v236_v10 }
 0x2ef   :  { %v231_v11 = vpop.xlane.xlu1 %230 }
 0x2f0   :  { %v240_v12 = vmul.f32 0.03125, %v231_v11 }
 0x2f1   :  { %v238_v13 = vpop.xlane.xlu0 %237 }
 0x2f2   :  { %v242_v14 = vmul.f32 %v240_v12, %v240_v12  ;;  %v241_v15 = vmul.f32 0.03125, %v238_v13 }
 0x2f4   :  { %v243_v16 = vsub.f32 %v241_v15, %v242_v14 }
 0x2f6   :  { %v244_v17 = vadd.f32 1e-05, %v243_v16 }
 0x2f8   :  { %330 = vrsqrt.f32 %v244_v17 }
 0x302   :  { %v331_v19 = vpop.eup %330 }
 0x303   :  { %v247_v20 = vmul.f32 %v331_v19, %v246_v18 }
 0x305   :  { %253 = vperm.xlu1 %329, %v247_v20   ;;  %v249_v22 = vmul.f32 %v247_v20, %v240_v12 }
 0x307   :  { %v250_v23 = vsub.f32 %v248_v21, %v249_v22 }
 0x309   :  { %260 = vperm.xlu0 %328, %v250_v23  }
 0x384   :  { %v254_v24 = vpop.permute.xlu1 %253 }
 0x385   :  { %v256_v25 = vmul.f32 %v254_v24, %v225_v60  ;;  %v257_v26 = vmul.f32 %v254_v24, %v226_v2 }
 0x388   :  { %v261_v27 = vpop.permute.xlu0 %260 }
 0x389   :  { %v263_v28 = vadd.f32 %v261_v27, %v256_v25  ;;  %v264_v29 = vadd.f32 %v261_v27, %v257_v26 }
 0x38b   :  { %265 = vst.msk [vmem:[#allocation2] sm:$0xff] %vm32_vm0, %v263_v28  ;;  %266 = vst.msk [vmem:[#allocation2 + $0x8] sm:$0xff] %vm32_vm0, %v264_v29 }
 0x38c   :  { %343 = shalt.err (!%p340_p4)
}
 0x38d   :  { %s344_s15 = scalar_lea.hbm %s475_s5, 256 }
 0x38e   :  { %p345_p5 = scmp.ne.s32.totalorder %s475_s5, %s344_s15  ;;  %p348_p6 = scmp.lt.u32.totalorder %s344_s15, %s475_s5 }
 0x390   :  { %p350_p7 = pnand %p348_p6, %p345_p5 }
 0x392   :  { %353 = shalt.err (!%p350_p7)
}
 0x393   :  { %s370_s20 = smov 128  }
 0x394   :  { %278 = dma.vmem_to_hbm [thread:$0]  %s273_s13, 256, %s475_s5, [#allocation3], %s370_s20, %s370_s20, %s364_s29  }
 0x395   :  { %354 = dma.done.wait [#allocation3], 256  }
 0x396   :  { %355 = vsyncadd [#allocation3], 4294967040 }
 0x397   :  { %282 = vsyncpa [#allocation3], 1 }

</bundles_post_ra>
